<compile_context>
chip_gen: v7x
topology: tpu7x:2x2x1
jax: 0.10.0
libtpu: 0.0.40
codegen_flags: <defaults>
</compile_context>

<pallas_src>
from functools import partial

import jax
import jax.numpy as jnp
from jax.experimental import pallas as pl
from jax.experimental.pallas import tpu as pltpu


def _pick_tile(n, cap, quantum):
    """Largest divisor of `n` that is a multiple of `quantum` and <= cap.
    Falls back to `n` (whole axis, always a legal block) if none exists."""
    if n <= cap:
        return n
    t = (cap // quantum) * quantum
    while t >= quantum:
        if n % t == 0:
            return t
        t -= quantum
    return n


# ---------- pass 1: global average pool + excitation -> per-(b, c) scale ------
def _pool_excite_kernel(x_ref, w1_ref, w2t_ref, scale_ref, acc_ref, *, inv_hw):
    # x_ref:     (1, C, hw_tile)  one batch element, one spatial tile
    # w1_ref:    (hidden, C)      PyTorch fc[0].weight (out, in) layout
    # w2t_ref:   (hidden, C)      PyTorch fc[2].weight, transposed
    # scale_ref: (1, 1, C)        per-channel sigmoid gate for this batch elem
    # acc_ref:   (1, C) f32       running spatial sum, resident across hw tiles
    k = pl.program_id(1)

    @pl.when(k == 0)
    def _():
        acc_ref[...] = jnp.zeros_like(acc_ref)

    x = x_ref[...]
    if x.dtype != jnp.float32:          # accumulate in f32; no-op copy when f32
        x = x.astype(jnp.float32)
    acc_ref[...] += jnp.sum(x, axis=-1)                 # (1, C) partial sum

    @pl.when(k == pl.num_programs(1) - 1)
    def _():
        y = acc_ref[...] * inv_hw                        # (1, C) global avg pool
        # fc1 + ReLU: contract over C along lanes (VPU mul + XLU lane reduce).
        h = jnp.maximum(jnp.sum(w1_ref[...] * y, axis=-1, keepdims=True), 0.0)
        # fc2 + sigmoid: contract over hidden along sublanes -> (1, C).
        s = jax.nn.sigmoid(jnp.sum(w2t_ref[...] * h, axis=0, keepdims=True))
        scale_ref[0] = s


# ---------- pass 2: x * scale, with B*C folded onto the sublane axis ----------
def _apply_scale_kernel(x_ref, s_ref, o_ref):
    # x_ref/o_ref: (row_tile, hw_tile); s_ref: (row_tile, 1) f32
    o_ref[...] = (x_ref[...] * s_ref[...]).astype(o_ref.dtype)


def _se_block_impl(x, w1, w2):
    """SE_Block forward. x: (B, C, H, W); w1: (hidden, C); w2: (C, hidden)."""
    B, C, H, W = x.shape
    HW = H * W
    hidden = w1.shape[0]

    hw_tile = _pick_tile(HW, 2048, 128)
    n_hw = HW // hw_tile

    # -- pass 1: pooled mean + excitation -> scale of shape (B, 1, C) ----------
    x3 = x.reshape(B, C, HW)
    scale = pl.pallas_call(
        partial(_pool_excite_kernel, inv_hw=1.0 / HW),
        out_shape=jax.ShapeDtypeStruct((B, 1, C), jnp.float32),
        grid_spec=pltpu.PrefetchScalarGridSpec(
            num_scalar_prefetch=0,
            grid=(B, n_hw),                              # reduction axis last
            in_specs=[
                pl.BlockSpec((1, C, hw_tile), lambda b, k: (b, 0, k)),
                pl.BlockSpec((hidden, C), lambda b, k: (0, 0)),  # resident
                pl.BlockSpec((hidden, C), lambda b, k: (0, 0)),  # resident
            ],
            out_specs=pl.BlockSpec((1, 1, C), lambda b, k: (b, 0, 0)),
            scratch_shapes=[pltpu.VMEM((1, C), jnp.float32)],
        ),
        compiler_params=pltpu.CompilerParams(
            dimension_semantics=("parallel", "arbitrary"),
            vmem_limit_bytes=32 * 1024 * 1024,
        ),
    )(x3, w1, w2.T)

    # -- pass 2: apply the per-(b, c) scale -------------------------------------
    rows = B * C
    row_tile = _pick_tile(rows, 256, 8)
    n_rows = rows // row_tile
    hw_tile2, n_hw2 = hw_tile, n_hw
    if n_rows * n_hw2 < 2:                 # keep both v7x TensorCores busy
        if HW % 256 == 0:                  # split HW but stay lane-dense
            hw_tile2, n_hw2 = HW // 2, 2
        elif rows % 16 == 0:
            row_tile, n_rows = rows // 2, 2

    x2 = x3.reshape(rows, HW)
    s2 = scale.reshape(rows, 1)
    out2 = pl.pallas_call(
        _apply_scale_kernel,
        out_shape=jax.ShapeDtypeStruct((rows, HW), x.dtype),
        grid_spec=pltpu.PrefetchScalarGridSpec(
            num_scalar_prefetch=0,
            grid=(n_rows, n_hw2),
            in_specs=[
                pl.BlockSpec((row_tile, hw_tile2), lambda r, k: (r, k)),
                pl.BlockSpec((row_tile, 1), lambda r, k: (r, 0)),
            ],
            out_specs=pl.BlockSpec((row_tile, hw_tile2), lambda r, k: (r, k)),
        ),
        compiler_params=pltpu.CompilerParams(
            dimension_semantics=("parallel", "parallel"),
            vmem_limit_bytes=32 * 1024 * 1024,
        ),
        input_output_aliases={0: 0},       # scaled x overwrites the same buffer
    )(x2, s2)

    return out2.reshape(B, C, H, W)


se_block = jax.jit(_se_block_impl)


def se_block_reference(x, w1, w2):
    """Pure-JAX reference matching the PyTorch SE_Block forward exactly."""
    y = jnp.mean(x, axis=(2, 3))                 # (B, C) adaptive avg pool
    y = jnp.maximum(y @ w1.T, 0.0)               # Linear(C->hidden) + ReLU
    y = jax.nn.sigmoid(y @ w2.T)                 # Linear(hidden->C) + Sigmoid
    return x * y[:, :, None, None]


if __name__ == "__main__":
    # SE_Block(ch_in=filters[0]=32, reduction=6) -> hidden = 5
    B, C, H, W = 2, 32, 16, 16
    reduction = 6
    hidden = C // reduction

    key = jax.random.PRNGKey(0)
    kx, k1, k2 = jax.random.split(key, 3)

    x = jax.random.normal(kx, (B, C, H, W), dtype=jnp.float32)
    # PyTorch Linear layout: (out_features, in_features), no bias.
    w1 = jax.random.normal(k1, (hidden, C), dtype=jnp.float32) * 0.3
    w2 = jax.random.normal(k2, (C, hidden), dtype=jnp.float32) * 0.3

    ref = jax.block_until_ready(se_block_reference(x, w1, w2))
    out = jax.block_until_ready(se_block(x, w1, w2))

    assert out.shape == (B, C, H, W)
    assert jnp.allclose(out, ref, atol=1e-5, rtol=1e-5), "mismatch vs reference"
    print("KERNEL_OK")
</pallas_src>

<mosaic_0001>
module attributes {stable_mosaic.version = 11 : i64} {
  func.func @_pool_excite_kernel(%arg0: i32, %arg1: i32, %arg2: memref<1x32x256xf32, #tpu.memory_space<vmem>>, %arg3: memref<5x32xf32, #tpu.memory_space<vmem>>, %arg4: memref<5x32xf32, #tpu.memory_space<vmem>>, %arg5: memref<1x1x32xf32, #tpu.memory_space<vmem>>, %arg6: memref<1x32xf32, #tpu.memory_space<vmem>>) attributes {dimension_semantics = [#tpu.dimension_semantics<parallel>, #tpu.dimension_semantics<arbitrary>], iteration_bounds = array<i64: 2, 1>, scalar_prefetch = 0 : i64, scratch_operands = 1 : i64, tpu.core_type = #tpu.core_type<tc>, window_params = [{transform_indices = @transform_0, window_bounds = array<i64: 1, 32, 256>}, {pipeline_mode = #tpu.pipeline_mode<synchronous>, transform_indices = @transform_1, window_bounds = array<i64: 5, 32>}, {pipeline_mode = #tpu.pipeline_mode<synchronous>, transform_indices = @transform_2, window_bounds = array<i64: 5, 32>}, {transform_indices = @transform_3, window_bounds = array<i64: 1, 1, 32>}]} {
    %c0_i32 = arith.constant 0 : i32
    %0 = arith.cmpi eq, %arg1, %c0_i32 : i32
    %1 = arith.extui %0 : i1 to i32
    %c0_i32_0 = arith.constant 0 : i32
    %2 = arith.cmpi ne, %1, %c0_i32_0 : i32
    scf.if %2 {
      %cst_9 = arith.constant 0.000000e+00 : f32
      %11 = vector.broadcast %cst_9 : f32 to vector<1x32xf32>
      %c0_10 = arith.constant 0 : index
      %c0_11 = arith.constant 0 : index
      %12 = vector.load %arg6[%c0_10, %c0_11] : memref<1x32xf32, #tpu.memory_space<vmem>>, vector<1x32xf32>
      tpu.vector_store %arg6[%c0_10, %c0_11], %11 {strides = array<i32>} : memref<1x32xf32, #tpu.memory_space<vmem>>, vector<1x32xf32>,
    } else {
    }
    %c0 = arith.constant 0 : index
    %c0_1 = arith.constant 0 : index
    %c0_2 = arith.constant 0 : index
    %3 = vector.load %arg2[%c0, %c0_1, %c0_2] : memref<1x32x256xf32, #tpu.memory_space<vmem>>, vector<1x32x256xf32>
    %c0_3 = arith.constant 0 : index
    %c0_4 = arith.constant 0 : index
    %4 = vector.load %arg6[%c0_3, %c0_4] : memref<1x32xf32, #tpu.memory_space<vmem>>, vector<1x32xf32>
    %cst = arith.constant dense<0.000000e+00> : vector<1x32xf32>
    %5 = vector.multi_reduction <add>, %3, %cst [2] : vector<1x32x256xf32> to vector<1x32xf32>
    %6 = arith.addf %4, %5 : vector<1x32xf32>
    %c0_5 = arith.constant 0 : index
    %c0_6 = arith.constant 0 : index
    %7 = vector.load %arg6[%c0_5, %c0_6] : memref<1x32xf32, #tpu.memory_space<vmem>>, vector<1x32xf32>
    tpu.vector_store %arg6[%c0_5, %c0_6], %6 {strides = array<i32>} : memref<1x32xf32, #tpu.memory_space<vmem>>, vector<1x32xf32>,
    %c0_i32_7 = arith.constant 0 : i32
    %8 = arith.cmpi eq, %arg1, %c0_i32_7 : i32
    %9 = arith.extui %8 : i1 to i32
    %c0_i32_8 = arith.constant 0 : i32
    %10 = arith.cmpi ne, %9, %c0_i32_8 : i32
    scf.if %10 {
      %c0_9 = arith.constant 0 : index
      %c0_10 = arith.constant 0 : index
      %11 = vector.load %arg6[%c0_9, %c0_10] : memref<1x32xf32, #tpu.memory_space<vmem>>, vector<1x32xf32>
      %cst_11 = arith.constant 3.906250e-03 : f32
      %12 = vector.broadcast %cst_11 : f32 to vector<1x32xf32>
      %13 = arith.mulf %11, %12 : vector<1x32xf32>
      %c0_12 = arith.constant 0 : index
      %c0_13 = arith.constant 0 : index
      %14 = vector.load %arg3[%c0_12, %c0_13] : memref<5x32xf32, #tpu.memory_space<vmem>>, vector<5x32xf32>
      %15 = vector.broadcast %13 : vector<1x32xf32> to vector<5x32xf32>
      %16 = arith.mulf %14, %15 : vector<5x32xf32>
      %cst_14 = arith.constant dense<0.000000e+00> : vector<5xf32>
      %17 = vector.multi_reduction <add>, %16, %cst_14 [1] : vector<5x32xf32> to vector<5xf32>
      %18 = vector.shape_cast %17 : vector<5xf32> to vector<5x1xf32>
      %cst_15 = arith.constant 0.000000e+00 : f32
      %19 = vector.broadcast %cst_15 : f32 to vector<5x1xf32>
      %20 = arith.maximumf %18, %19 : vector<5x1xf32>
      %c0_16 = arith.constant 0 : index
      %c0_17 = arith.constant 0 : index
      %21 = vector.load %arg4[%c0_16, %c0_17] : memref<5x32xf32, #tpu.memory_space<vmem>>, vector<5x32xf32>
      %22 = vector.broadcast %20 : vector<5x1xf32> to vector<5x32xf32>
      %23 = arith.mulf %21, %22 : vector<5x32xf32>
      %cst_18 = arith.constant dense<0.000000e+00> : vector<32xf32>
      %24 = vector.multi_reduction <add>, %23, %cst_18 [0] : vector<5x32xf32> to vector<32xf32>
      %25 = vector.shape_cast %24 : vector<32xf32> to vector<1x32xf32>
      %26 = arith.negf %25 : vector<1x32xf32>
      %27 = math.exp %26 : vector<1x32xf32>
      %cst_19 = arith.constant 1.000000e+00 : f32
      %28 = vector.broadcast %cst_19 : f32 to vector<1x32xf32>
      %29 = arith.addf %28, %27 : vector<1x32xf32>
      %30 = arith.divf %28, %29 : vector<1x32xf32>
      %c0_20 = arith.constant 0 : index
      %c0_21 = arith.constant 0 : index
      %c0_22 = arith.constant 0 : index
      %31 = vector.load %arg5[%c0_20, %c0_21, %c0_22] : memref<1x1x32xf32, #tpu.memory_space<vmem>>, vector<1x1x32xf32>
      %32 = vector.shape_cast %31 : vector<1x1x32xf32> to vector<1x32xf32>
      %33 = vector.shape_cast %30 : vector<1x32xf32> to vector<1x1x32xf32>
      tpu.vector_store %arg5[%c0_20, %c0_21, %c0_22], %33 {strides = array<i32>} : memref<1x1x32xf32, #tpu.memory_space<vmem>>, vector<1x1x32xf32>,
    } else {
    }
    return
  }
  func.func @transform_0(%arg0: i32, %arg1: i32) -> (i32, i32, i32) {
    %c0_i32 = arith.constant 0 : i32
    %c0_i32_0 = arith.constant 0 : i32
    return %arg0, %c0_i32, %arg1 : i32, i32, i32
  }
  func.func @transform_1(%arg0: i32, %arg1: i32) -> (i32, i32) {
    %c0_i32 = arith.constant 0 : i32
    %c0_i32_0 = arith.constant 0 : i32
    %c0_i32_1 = arith.constant 0 : i32
    return %c0_i32, %c0_i32_0 : i32, i32
  }
  func.func @transform_2(%arg0: i32, %arg1: i32) -> (i32, i32) {
    %c0_i32 = arith.constant 0 : i32
    %c0_i32_0 = arith.constant 0 : i32
    %c0_i32_1 = arith.constant 0 : i32
    return %c0_i32, %c0_i32_0 : i32, i32
  }
  func.func @transform_3(%arg0: i32, %arg1: i32) -> (i32, i32, i32) {
    %c0_i32 = arith.constant 0 : i32
    %c0_i32_0 = arith.constant 0 : i32
    %c0_i32_1 = arith.constant 0 : i32
    return %arg0, %c0_i32, %c0_i32_0 : i32, i32, i32
  }
}

module attributes {stable_mosaic.version = 11 : i64} {
  func.func @_apply_scale_kernel(%arg0: i32, %arg1: i32, %arg2: memref<64x128xf32, #tpu.memory_space<vmem>>, %arg3: memref<64x1xf32, #tpu.memory_space<vmem>>, %arg4: memref<64x128xf32, #tpu.memory_space<vmem>>) attributes {dimension_semantics = [#tpu.dimension_semantics<parallel>, #tpu.dimension_semantics<parallel>], iteration_bounds = array<i64: 1, 2>, scalar_prefetch = 0 : i64, scratch_operands = 0 : i64, tpu.core_type = #tpu.core_type<tc>, window_params = [{transform_indices = @transform_0, window_bounds = array<i64: 64, 128>}, {transform_indices = @transform_1, window_bounds = array<i64: 64, 1>}, {transform_indices = @transform_2, window_bounds = array<i64: 64, 128>}]} {
    %c0 = arith.constant 0 : index
    %c0_0 = arith.constant 0 : index
    %0 = vector.load %arg2[%c0, %c0_0] : memref<64x128xf32, #tpu.memory_space<vmem>>, vector<64x128xf32>
    %c0_1 = arith.constant 0 : index
    %c0_2 = arith.constant 0 : index
    %1 = vector.load %arg3[%c0_1, %c0_2] : memref<64x1xf32, #tpu.memory_space<vmem>>, vector<64x1xf32>
    %2 = vector.broadcast %1 : vector<64x1xf32> to vector<64x128xf32>
    %3 = arith.mulf %0, %2 : vector<64x128xf32>
    %c0_3 = arith.constant 0 : index
    %c0_4 = arith.constant 0 : index
    %4 = vector.load %arg4[%c0_3, %c0_4] : memref<64x128xf32, #tpu.memory_space<vmem>>, vector<64x128xf32>
    tpu.vector_store %arg4[%c0_3, %c0_4], %3 {strides = array<i32>} : memref<64x128xf32, #tpu.memory_space<vmem>>, vector<64x128xf32>,
    return
  }
  func.func @transform_0(%arg0: i32, %arg1: i32) -> (i32, i32) {
    %c0_i32 = arith.constant 0 : i32
    return %arg0, %arg1 : i32, i32
  }
  func.func @transform_1(%arg0: i32, %arg1: i32) -> (i32, i32) {
    %c0_i32 = arith.constant 0 : i32
    %c0_i32_0 = arith.constant 0 : i32
    return %arg0, %c0_i32 : i32, i32
  }
  func.func @transform_2(%arg0: i32, %arg1: i32) -> (i32, i32) {
    %c0_i32 = arith.constant 0 : i32
    return %arg0, %arg1 : i32, i32
  }
}

</mosaic_0001>

<bundles_post_ra>
// kernel: _se_block_impl.2
= control target key start
LH: loop header
LB: loop body
LE: loop exit
PB: predicated region body
PF: predicated region fallthrough
CT: control target
= control target key end

     0   :  { %s793_s12 = smov 0   ;;  %s795_s13 = smov 0   ;;  %s933_s0 = inlined_call_operand.vmem [shape: f32[2,32,256], index: 0, kind: input, shape index: {}]   ;;  %s934_s1 = inlined_call_operand.vmem [shape: f32[5,32], index: 1, kind: input, shape index: {}]   ;;  %s935_s2 = inlined_call_operand.vmem [shape: f32[5,32], index: 2, kind: input, shape index: {}]   ;;  %s936_s3 = inlined_call_operand.vmem [shape: f32[2,1,32], index: 3, kind: output, shape index: {}]  }
   0x1   :  { %s797_s14 = smov 0  }
   0x2 LB: > { %s25_s15 = sadd.s32 1, %s764_s13  ;;  %p706_p0 = scmp.ge.s32.totalorder %s768_s14, 1  ;;  %s768_s14 = sphi %s797_s14, %s13_s14   ;;  %s764_s13 = sphi %s795_s13, %s938_s13   ;;  %s760_s12 = sphi %s793_s12, %s937_s12  }
   0x3   : > { %p27_p1 = scmp.ge.s32.totalorder %s25_s15, 2  ;;  %p156_p2 = scmp.lt.s32.totalorder %s768_s14, 3 }
   0x5   : > { %s940_s15 = smov (%p27_p1, %s25_s15), 0  ;;  %p157_p3 = pnand %p706_p0, %p156_p2 }
   0x6   : > { %p183_p4 = scmp.lt.s32.totalorder (!%p157_p3), %s760_s12, 1  ;;  %v770_v12 = vmov (!%p157_p3), 0   ;;  %v226_v13 = vlaneseq (!%p157_p3)  ;;  %v771_v14 = vmov (!%p157_p3), 1966171168   ;;  %vm199_vm0 = vcmask (!%p157_p3), 253952  }
   0x7   : > { %160 = sbr.rel (%p157_p3) target bundleno = 528 (0x210), region = 32  ;;  %740 = vset.pattern.permute.xlu0 (!%p157_p3), %v770_v12  ;;  %741 = vset.pattern.permute.xlu1 (!%p157_p3), %v770_v12  ;;  %v359_v15 = vunpack.c.l.s4 (!%p157_p3), %v771_v14  ;;  %vm573_vm1 = vcmask (!%p157_p3), 130112   ;;  %vm580_vm2 = vcmask (!%p157_p3), 195712   ;;  %vm587_vm3 = vcmask (!%p157_p3), 261312  }
   0x8   : > { %v818_v16 = vshrl.u32 (!%p157_p3), %v226_v13, 7  ;;  %vm620_vm4 = vcmask (!%p157_p3), 258048  }
   0x9   : > { %v360_v17 = vunpack.c.0.s8 (!%p157_p3), %v359_v15 }
   0xa   : > { %v821_v18 = vsub.s32 (!%p157_p3), 0, %v818_v16  ;;  %v824_v19 = vsub.s32 (!%p157_p3), 1, %v818_v16  ;;  %v827_v20 = vsub.s32 (!%p157_p3), 2, %v818_v16  ;;  %v830_v21 = vsub.s32 (!%p157_p3), 3, %v818_v16 }
   0xb   : > { %v833_v22 = vsub.s32 (!%p157_p3), 4, %v818_v16  ;;  %v836_v23 = vsub.s32 (!%p157_p3), 5, %v818_v16  ;;  %v839_v24 = vsub.s32 (!%p157_p3), 6, %v818_v16  ;;  %v842_v25 = vsub.s32 (!%p157_p3), 7, %v818_v16 }
   0xc   : > { %v845_v27 = vsub.s32 (!%p157_p3), %v360_v17, %v818_v16 }
   0xe   : > { %s942_s12 = smov (!%p183_p4, %s760_s12), 1 }
   0xf   : > { %s712_s16 = sshll.u32 %s942_s12, 6  ;;  %s194_s26 = scalar_lea.vmem %s936_s3, %s942_s12 }
  0x10   : > { %s190_s19 = scalar_lea.vmem %s933_s0, %s712_s16 }
  0x11   : > { %v201_v0 = vld [vmem:[%s190_s19] sm:$0xff]  ;;  %v202_v1 = vld [vmem:[%s190_s19 + $0x8] sm:$0xff]  ;;  %v203_v2 = vld [vmem:[%s190_s19 + $0x10] sm:$0xff] }
  0x12   : > { %v210_v3 = vadd.f32 %v202_v1, %v201_v0  ;;  %v204_v4 = vld [vmem:[%s190_s19 + $0x18] sm:$0xff]  ;;  %v205_v5 = vld [vmem:[%s190_s19 + $0x20] sm:$0xff]  ;;  %v206_v6 = vld [vmem:[%s190_s19 + $0x28] sm:$0xff] }
  0x13   : > { %v216_v7 = vadd.f32 %v206_v6, %v205_v5  ;;  %v207_v8 = vld [vmem:[%s190_s19 + $0x30] sm:$0xff]  ;;  %v208_v9 = vld [vmem:[%s190_s19 + $0x38] sm:$0xff]  ;;  %v213_v10 = vadd.f32 %v204_v4, %v203_v2 }
  0x14   : > { %211 = vadd.xlane.f32.xlu0 %v210_v3  ;;  %v219_v11 = vadd.f32 %v208_v9, %v207_v8 }
  0x15   : > { %217 = vadd.xlane.f32.xlu1 %v216_v7 }
  0x18   : > { %214 = vadd.xlane.f32.xlu0 %v213_v10 }
  0x19   : > { %220 = vadd.xlane.f32.xlu1 %v219_v11 }
  0xa1   : > { %v212_v26 = vpop.xlane.xlu0 %211 }
  0xa2   : > { %v218_v28 = vpop.xlane.xlu1 %217  ;;  %v229_v29 = vrot.slane %v212_v26, %v821_v18  ;;  %v233_v30 = vrot.slane %v212_v26, %v824_v19  ;;  %v237_v31 = vrot.slane %v212_v26, %v827_v20  ;;  %v241_v32 = vrot.slane %v212_v26, %v830_v21 }
  0xa3   : > { %v245_v33 = vrot.slane %v212_v26, %v833_v22  ;;  %v249_v34 = vrot.slane %v212_v26, %v836_v23  ;;  %v253_v35 = vrot.slane %v212_v26, %v839_v24  ;;  %v257_v36 = vrot.slane %v212_v26, %v842_v25 }
  0xa4   : > { %v354_v37 = vcombine.low %v229_v29, %v233_v30  ;;  %v355_v38 = vcombine.low %v237_v31, %v241_v32  ;;  %v293_v39 = vrot.slane %v218_v28, %v821_v18  ;;  %v297_v40 = vrot.slane %v218_v28, %v824_v19 }
  0xa5   : > { %v215_v41 = vpop.xlane.xlu0 %214  ;;  %v356_v42 = vcombine.low %v245_v33, %v249_v34  ;;  %v357_v43 = vcombine.low %v253_v35, %v257_v36  ;;  %v301_v44 = vrot.slane %v218_v28, %v827_v20  ;;  %v305_v45 = vrot.slane %v218_v28, %v830_v21 }
  0xa6   : > { %v364_v46 = vrot.slane %v354_v37, %v845_v27  ;;  %v371_v47 = vrot.slane %v355_v38, %v845_v27  ;;  %v261_v48 = vrot.slane %v215_v41, %v821_v18  ;;  %v265_v49 = vrot.slane %v215_v41, %v824_v19  ;;  %v221_v2 = vpop.xlane.xlu1 %220 }
  0xa7   : > { %v378_v50 = vrot.slane %v356_v42, %v845_v27  ;;  %v385_v51 = vrot.slane %v357_v43, %v845_v27  ;;  %v269_v52 = vrot.slane %v215_v41, %v827_v20  ;;  %v273_v53 = vrot.slane %v215_v41, %v830_v21 }
  0xa8   : > { %v386_v54 = vcombine.low %v364_v46, %v371_v47  ;;  %v277_v55 = vrot.slane %v215_v41, %v833_v22  ;;  %v281_v56 = vrot.slane %v215_v41, %v836_v23  ;;  %v285_v57 = vrot.slane %v215_v41, %v839_v24 }
  0xa9   : > { %v387_v58 = vcombine.low %v378_v50, %v385_v51  ;;  %v289_v59 = vrot.slane %v215_v41, %v842_v25  ;;  %v403_v60 = vcombine.low %v261_v48, %v265_v49  ;;  %v404_v61 = vcombine.low %v269_v52, %v273_v53 }
  0xaa   : > { %v394_v62 = vrot.slane %v386_v54, %v845_v27  ;;  %v405_v63 = vcombine.low %v277_v55, %v281_v56  ;;  %v309_v0 = vrot.slane %v218_v28, %v833_v22  ;;  %v313_v1 = vrot.slane %v218_v28, %v836_v23 }
  0xab   : > { %v401_v3 = vrot.slane %v387_v58, %v845_v27  ;;  %v406_v4 = vcombine.low %v285_v57, %v289_v59  ;;  %v413_v5 = vrot.slane %v403_v60, %v845_v27  ;;  %v420_v6 = vrot.slane %v404_v61, %v845_v27 }
  0xac   : > { %v427_v7 = vrot.slane %v405_v63, %v845_v27  ;;  %v317_v8 = vrot.slane %v218_v28, %v839_v24  ;;  %v321_v9 = vrot.slane %v218_v28, %v842_v25  ;;  %v452_v10 = vcombine.low %v293_v39, %v297_v40 }
  0xad   : > { %v402_v11 = vcombine.low %v394_v62, %v401_v3  ;;  %v434_v12 = vrot.slane %v406_v4, %v845_v27  ;;  %v435_v14 = vcombine.low %v413_v5, %v420_v6  ;;  %v453_v15 = vcombine.low %v301_v44, %v305_v45 }
  0xae   : > { %v454_v17 = vcombine.low %v309_v0, %v313_v1  ;;  %v455_v26 = vcombine.low %v317_v8, %v321_v9  ;;  %v462_v29 = vrot.slane %v452_v10, %v845_v27  ;;  %v325_v30 = vrot.slane %v221_v2, %v821_v18 }
  0xaf   : > { %551 = vperm.xlu0 %740, %v402_v11   ;;  %v436_v31 = vcombine.low %v427_v7, %v434_v12  ;;  %v443_v32 = vrot.slane %v435_v14, %v845_v27  ;;  %v469_v33 = vrot.slane %v453_v15, %v845_v27  ;;  %v329_v28 = vrot.slane %v221_v2, %v824_v19 }
  0xb0   : > { %v476_v34 = vrot.slane %v454_v17, %v845_v27  ;;  %v483_v35 = vrot.slane %v455_v26, %v845_v27  ;;  %v333_v36 = vrot.slane %v221_v2, %v827_v20  ;;  %v337_v37 = vrot.slane %v221_v2, %v830_v21  ;;  %v612_v17 = vld [vmem:[%s934_s1] sm:$0x1f] }
  0xb1   : > { %v450_v38 = vrot.slane %v436_v31, %v845_v27  ;;  %v484_v39 = vcombine.low %v462_v29, %v469_v33  ;;  %v341_v40 = vrot.slane %v221_v2, %v833_v22  ;;  %v345_v41 = vrot.slane %v221_v2, %v836_v23  ;;  %v625_v31 = vld [vmem:[%s935_s2] sm:$0x1f] }
  0xb2   : > { %v485_v42 = vcombine.low %v476_v34, %v483_v35  ;;  %v349_v43 = vrot.slane %v221_v2, %v839_v24  ;;  %v353_v19 = vrot.slane %v221_v2, %v842_v25  ;;  %v501_v44 = vcombine.low %v325_v30, %v329_v28 }
  0xb3   : > { %v451_v45 = vcombine.low %v443_v32, %v450_v38  ;;  %v492_v46 = vrot.slane %v484_v39, %v845_v27  ;;  %v502_v47 = vcombine.low %v333_v36, %v337_v37  ;;  %v503_v20 = vcombine.low %v341_v40, %v345_v41 }
  0xb4   : > { %v499_v21 = vrot.slane %v485_v42, %v845_v27  ;;  %v504_v48 = vcombine.low %v349_v43, %v353_v19  ;;  %v511_v49 = vrot.slane %v501_v44, %v845_v27  ;;  %v772_v55 = vmov 0.0  }
  0xb5   : > { %554 = vperm.xlu1 %741, %v451_v45   ;;  %v518_v22 = vrot.slane %v502_v47, %v845_v27  ;;  %v525_v23 = vrot.slane %v503_v20, %v845_v27  ;;  %200 = vst.msk [vmem:[#allocation2] sm:$0x1] %vm199_vm0, %v772_v55  ;;  %v563_v56 = vand.u32 127, %v226_v13 }
  0xb6   : > { %v500_v50 = vcombine.low %v492_v46, %v499_v21  ;;  %v532_v24 = vrot.slane %v504_v48, %v845_v27 }
  0xb7   : > { %v533_v25 = vcombine.low %v511_v49, %v518_v22  ;;  %v568_v57 = vadd.s32 4294967288, %v563_v56  ;;  %v575_v58 = vadd.s32 4294967280, %v563_v56  ;;  %v582_v61 = vadd.s32 4294967272, %v563_v56 }
  0xb8   : > { %v534_v51 = vcombine.low %v525_v23, %v532_v24  ;;  %v566_v63 = vsub.s32 %v563_v56, %v818_v16 }
  0xb9   : > { %557 = vperm.xlu1 %741, %v500_v50   ;;  %v541_v52 = vrot.slane %v533_v25, %v845_v27  ;;  %v571_v60 = vsub.s32 %v568_v57, %v818_v16  ;;  %v578_v62 = vsub.s32 %v575_v58, %v818_v16  ;;  %v585_v3 = vsub.s32 %v582_v61, %v818_v16 }
  0xba   : > { %v548_v53 = vrot.slane %v534_v51, %v845_v27 }
  0xbc   : > { %v549_v54 = vcombine.low %v541_v52, %v548_v53  ;;  %v209_v11 = vld [vmem:[#allocation2] sm:$0x1] }
  0xbe   : > { %560 = vperm.xlu1 %741, %v549_v54  }
 0x12e   : > { %v552_v1 = vpop.permute.xlu0 %551 }
 0x12f   : > { %v567_v5 = vrot.slane %v552_v1, %v566_v63 }
 0x134   : > { %v555_v59 = vpop.permute.xlu1 %554 }
 0x135   : > { %v572_v2 = vrot.slane %v555_v59, %v571_v60 }
 0x137   : > { %v574_v6 = vsel %vm573_vm1, %v572_v2, %v567_v5 }
 0x138   : > { %v558_v0 = vpop.permute.xlu1 %557 }
 0x139   : > { %v579_v4 = vrot.slane %v558_v0, %v578_v62 }
 0x13b   : > { %v581_v8 = vsel %vm580_vm2, %v579_v4, %v574_v6 }
 0x13d   : > { %v561_v13 = vpop.permute.xlu1 %560 }
 0x13e   : > { %v586_v7 = vrot.slane %v561_v13, %v585_v3 }
 0x140   : > { %v588_v9 = vsel %vm587_vm3, %v586_v7, %v581_v8 }
 0x141   : > { %v595_v10 = vrot.slane %v588_v9, %v845_v27 }
 0x143   : > { %v602_v12 = vrot.slane %v595_v10, %v845_v27 }
 0x145   : > { %v604_v14 = vadd.f32 %v602_v12, %v209_v11 }
 0x147   : > { %606 = vst.msk [vmem:[#allocation2] sm:$0x1] %vm199_vm0, %v604_v14 }
 0x14e   : > { %v610_v15 = vld [vmem:[#allocation2] sm:$0x1] }
 0x14f   : > { %v611_v16 = vmul.f32 0.00390625, %v610_v15 }
 0x151   : > { %v617_v26 = vrot.slane %v611_v16, %v821_v18 }
 0x153   : > { %v619_v29 = vmul.f32 %v617_v26, %v612_v17 }
 0x155   : > { %v621_v30 = vsel %vm620_vm4, %v619_v29, 0.0 }
 0x156   : > { %622 = vadd.xlane.f32.xlu1 %v621_v30 }
 0x1e3   : > { %v623_v27 = vpop.xlane.xlu1 %622 }
 0x1e4   : > { %v624_v32 = vmax.f32 %v623_v27, 0.0 }
 0x1e6   : > { %v626_v33 = vmul.f32 %v625_v31, %v624_v32 }
 0x1e8   : > { %v627_v28 = vsel %vm620_vm4, %v626_v33, 0.0 }
 0x1e9   : > { %v628_v34 = vrot.slane %v627_v28, 4 }
 0x1eb   : > { %v629_v35 = vadd.f32 %v628_v34, %v627_v28 }
 0x1ed   : > { %v630_v36 = vrot.slane %v629_v35, 2 }
 0x1ef   : > { %v631_v37 = vadd.f32 %v630_v36, %v629_v35 }
 0x1f1   : > { %v632_v38 = vrot.slane %v631_v37, 1 }
 0x1f3   : > { %v633_v39 = vadd.f32 %v632_v38, %v631_v37 }
 0x1f5   : > { %v709_v18 = vmul.f32 -1.442695, %v633_v39 }
 0x1f7   : > { %742 = vpow2.f32 %v709_v18 }
 0x201   : > { %v743_v40 = vpop.eup %742 }
 0x202   : > { %v637_v41 = vadd.f32 1.0, %v743_v40 }
 0x204   : > { %744 = vrcp.f32 %v637_v41 }
 0x20e   : > { %v745_v42 = vpop.eup %744 }
 0x20f   : > { %640 = vst.msk [vmem:[%s194_s26] sm:$0x1] %vm199_vm0, %v745_v42 }
 0x210 PF: > { %s13_s14 = sadd.s32 1, %s768_s14   ;;  %s937_s12 = smov %s764_s13 }
 0x211   : > { %p10_p5 = scmp.ge.s32.totalorder %s13_s14, 4   ;;  %s938_s13 = smov %s940_s15 }
 0x213   :  { %12 = sbr.rel (!%p10_p5) target bundleno = 2 (0x2), region = 70 }

// kernel: _se_block_impl.3
= control target key start
LH: loop header
LB: loop body
LE: loop exit
PB: predicated region body
PF: predicated region fallthrough
CT: control target
= control target key end

     0   :  { %s584_s9 = smov 0   ;;  %s586_s10 = smov 0   ;;  %s698_s0 = inlined_call_operand.vmem [shape: f32[64,256], index: 0, kind: input, shape index: {}, may-alias: {0,2}]   ;;  %s699_s1 = inlined_call_operand.vmem [shape: f32[64,1], index: 1, kind: input, shape index: {}]   ;;  %s700_s2 = inlined_call_operand.vmem [shape: f32[64,256], index: 2, kind: output, shape index: {}, may-alias: {0,2}]  }
   0x1   :  { %s588_s11 = smov 0   ;;  %s590_s12 = smov 0  }
   0x2   :  { %s592_s13 = smov 0  }
   0x3 LB: > { %s21_s14 = sadd.s32 1, %s562_s12  ;;  %s471_s15 = sadd.s32 4294967295, %s566_s13   ;;  %s566_s13 = sphi %s592_s13, %s12_s13   ;;  %s562_s12 = sphi %s590_s12, %s705_s12   ;;  %s558_s11 = sphi %s588_s11, %s704_s11   ;;  %s554_s10 = sphi %s586_s10, %s703_s10   ;;  %s550_s9 = sphi %s584_s9, %s702_s9  }
   0x4   : > { %p22_p0 = scmp.ge.s32.totalorder %s21_s14, 2  ;;  %p40_p1 = scmp.ne.s32.totalorder %s554_s10, %s550_s9 }
   0x5   : > { %p41_p2 = scmp.eq.s32.totalorder %s566_s13, 0  ;;  %p98_p4 = scmp.eq.s32.totalorder %s471_s15, 1 }
   0x6   : > { %s707_s14 = smov (%p22_p0, %s21_s14), 0  ;;  %s33_s17 = sadd.s32 1, %s554_s10 }
   0x7   : > { %p42_p3 = por %p41_p2, %p40_p1  ;;  %s29_s16 = ssub.s32 %s562_s12, %s707_s14 }
   0x8   : > { %p31_p5 = scmp.eq.s32.totalorder %s29_s16, 0  ;;  %p619_p6 = por %p98_p4, %p40_p1 }
   0x9   : > { %p475_p7 = scmp.ge.s32.totalorder %s566_s13, 2 }
   0xa   : > { %s624_s19 = scalar_select %p31_p5, %s554_s10, %s33_s17  }
   0xb   : > { %129 = sbr.rel (%p475_p7) target bundleno = 26 (0x1a), region = 20 }
  0x12   : > { %132 = sbr.rel (!%p42_p3) target bundleno = 26 (0x1a), region = 24  ;;  %s134_s20 = sand.u32 (%p42_p3), 1, %s554_s10  }
  0x13   : > { %s477_s21 = sshll.u32 (%p42_p3), %s562_s12, 3  ;;  %s476_s22 = sshll.u32 (%p42_p3), %s134_s20, 6 }
  0x14   : > { %s141_s25 = scalar_lea.vmem (%p42_p3), %s698_s0, %s477_s21  ;;  %s136_s26 = scalar_lea.vmem (%p42_p3), [#allocation2], %s476_s22 }
  0x15   : > { %v183_v0 = vld [vmem:[%s141_s25] sm:$0xff] (%p42_p3)  ;;  %v185_v1 = vld [vmem:[%s141_s25 + $0x10] sm:$0xff] (%p42_p3) }
  0x16   : > { %v187_v2 = vld [vmem:[%s141_s25 + $0x20] sm:$0xff] (%p42_p3)  ;;  %184 = vst [vmem:[%s136_s26] sm:$0xff] (%p42_p3), %v183_v0  ;;  %186 = vst [vmem:[%s136_s26 + $0x8] sm:$0xff] (%p42_p3), %v185_v1  ;;  %v189_v3 = vld [vmem:[%s141_s25 + $0x30] sm:$0xff] (%p42_p3) }
  0x17   : > { %188 = vst [vmem:[%s136_s26 + $0x10] sm:$0xff] (%p42_p3), %v187_v2  ;;  %v191_v4 = vld [vmem:[%s141_s25 + $0x40] sm:$0xff] (%p42_p3)  ;;  %v193_v5 = vld [vmem:[%s141_s25 + $0x50] sm:$0xff] (%p42_p3)  ;;  %190 = vst [vmem:[%s136_s26 + $0x18] sm:$0xff] (%p42_p3), %v189_v3 }
  0x18   : > { %192 = vst [vmem:[%s136_s26 + $0x20] sm:$0xff] (%p42_p3), %v191_v4  ;;  %194 = vst [vmem:[%s136_s26 + $0x28] sm:$0xff] (%p42_p3), %v193_v5  ;;  %v195_v6 = vld [vmem:[%s141_s25 + $0x60] sm:$0xff] (%p42_p3)  ;;  %v197_v7 = vld [vmem:[%s141_s25 + $0x70] sm:$0xff] (%p42_p3) }
  0x19   : > { %196 = vst [vmem:[%s136_s26 + $0x30] sm:$0xff] %v195_v6  ;;  %198 = vst [vmem:[%s136_s26 + $0x38] sm:$0xff] %v197_v7 }
  0x1a PF: > { %p478_p8 = scmp.ge.s32.totalorder %s566_s13, 1  ;;  %p203_p9 = scmp.lt.s32.totalorder %s566_s13, 3 }
  0x1c   : > { %p204_p10 = pnand %p478_p8, %p203_p9 }
  0x1d   : > { %v253_v8 = vld [vmem:[%s699_s1 + $0x10] sm:$0xff] (!%p204_p10)  ;;  %v251_v9 = vld [vmem:[%s699_s1] sm:$0xff] (!%p204_p10)  ;;  %v568_v10 = vmov (!%p204_p10), 0   ;;  %v254_v11 = vld [vmem:[%s699_s1 + $0x18] sm:$0xff] (!%p204_p10)  ;;  %s210_s23 = sand.u32 (!%p204_p10), 1, %s550_s9  }
  0x1e   : > { %207 = sbr.rel (%p204_p10) target bundleno = 182 (0xb6), region = 62  ;;  %527 = vset.pattern.permute.xlu1 (!%p204_p10), %v568_v10  ;;  %526 = vset.pattern.permute.xlu0 (!%p204_p10), %v568_v10  ;;  %v252_v12 = vld [vmem:[%s699_s1 + $0x8] sm:$0xff] (!%p204_p10)  ;;  %v255_v14 = vld [vmem:[%s699_s1 + $0x20] sm:$0xff] (!%p204_p10)  ;;  %v258_v15 = vld [vmem:[%s699_s1 + $0x38] sm:$0xff] (!%p204_p10)  ;;  %s479_s24 = sshll.u32 (!%p204_p10), %s210_s23, 6 }
  0x1f   : > { %271 = vperm.xlu1 (!%p204_p10), %527, %v253_v8   ;;  %261 = vperm.xlu0 (!%p204_p10), %526, %v251_v9   ;;  %v256_v13 = vld [vmem:[%s699_s1 + $0x28] sm:$0xff] (!%p204_p10)  ;;  %v257_v16 = vld [vmem:[%s699_s1 + $0x30] sm:$0xff] (!%p204_p10)  ;;  %s212_s25 = scalar_lea.vmem (!%p204_p10), [#allocation2], %s479_s24  ;;  %s659_s26 = scalar_lea.vmem (!%p204_p10), [#allocation3], %s479_s24 }
  0x20   : > { %v245_v17 = vld [vmem:[%s212_s25 + $0x10] sm:$0xff] (!%p204_p10)  ;;  %v243_v18 = vld [vmem:[%s212_s25] sm:$0xff] (!%p204_p10)  ;;  %v246_v23 = vld [vmem:[%s212_s25 + $0x18] sm:$0xff] (!%p204_p10) }
  0x21   : > { %v244_v24 = vld [vmem:[%s212_s25 + $0x8] sm:$0xff] (!%p204_p10)  ;;  %v247_v30 = vld [vmem:[%s212_s25 + $0x20] sm:$0xff] (!%p204_p10)  ;;  %v250_v35 = vld [vmem:[%s212_s25 + $0x38] sm:$0xff] (!%p204_p10) }
  0x22   : > { %v248_v29 = vld [vmem:[%s212_s25 + $0x28] sm:$0xff] (!%p204_p10)  ;;  %v249_v36 = vld [vmem:[%s212_s25 + $0x30] sm:$0xff] (!%p204_p10) }
  0x23   : > { %276 = vperm.xlu1 (!%p204_p10), %527, %v254_v11   ;;  %266 = vperm.xlu0 (!%p204_p10), %526, %v252_v12  }
  0x25   : > { %s482_s9 = sshll.u32 (%p619_p6), %s558_s11, 3 }
  0x26   : > { %s326_s29 = scalar_lea.vmem (%p619_p6), %s700_s2, %s482_s9 }
  0x27   : > { %286 = vperm.xlu1 %527, %v256_v13   ;;  %281 = vperm.xlu0 %526, %v255_v14  }
  0x2b   : > { %296 = vperm.xlu1 %527, %v258_v15   ;;  %291 = vperm.xlu0 %526, %v257_v16  }
  0x9e   : > { %v272_v19 = vpop.permute.xlu1 %271  ;;  %v262_v20 = vpop.permute.xlu0 %261 }
  0x9f   : > { %v301_v21 = vmul.f32 %v272_v19, %v245_v17  ;;  %v299_v22 = vmul.f32 %v262_v20, %v243_v18 }
  0xa1   : > { %309 = vst [vmem:[%s659_s26 + $0x10] sm:$0xff] %v301_v21  ;;  %307 = vst [vmem:[%s659_s26] sm:$0xff] %v299_v22 }
  0xa2   : > { %v277_v25 = vpop.permute.xlu1 %276  ;;  %v267_v26 = vpop.permute.xlu0 %266 }
  0xa3   : > { %v302_v27 = vmul.f32 %v277_v25, %v246_v23  ;;  %v300_v28 = vmul.f32 %v267_v26, %v244_v24 }
  0xa5   : > { %310 = vst [vmem:[%s659_s26 + $0x18] sm:$0xff] %v302_v27  ;;  %308 = vst [vmem:[%s659_s26 + $0x8] sm:$0xff] %v300_v28 }
  0xa6   : > { %v287_v31 = vpop.permute.xlu1 %286  ;;  %v282_v32 = vpop.permute.xlu0 %281 }
  0xa7   : > { %v304_v33 = vmul.f32 %v287_v31, %v248_v29  ;;  %v303_v34 = vmul.f32 %v282_v32, %v247_v30  ;;  %321 = sbr.rel (!%p619_p6) target bundleno = 182 (0xb6), region = 70 }
  0xa8   : > { %v368_v41 = vld [vmem:[%s659_s26] sm:$0xff] (%p619_p6)  ;;  %v372_v43 = vld [vmem:[%s659_s26 + $0x10] sm:$0xff] (%p619_p6) }
  0xa9   : > { %312 = vst [vmem:[%s659_s26 + $0x28] sm:$0xff] %v304_v33  ;;  %311 = vst [vmem:[%s659_s26 + $0x20] sm:$0xff] %v303_v34 }
  0xaa   : > { %v297_v37 = vpop.permute.xlu1 %296  ;;  %v292_v38 = vpop.permute.xlu0 %291  ;;  %369 = vst [vmem:[%s326_s29] sm:$0xff] (%p619_p6), %v368_v41  ;;  %373 = vst [vmem:[%s326_s29 + $0x20] sm:$0xff] (%p619_p6), %v372_v43 }
  0xab   : > { %v306_v39 = vmul.f32 %v297_v37, %v250_v35  ;;  %v305_v40 = vmul.f32 %v292_v38, %v249_v36 }
  0xac   : > { %v370_v42 = vld [vmem:[%s659_s26 + $0x8] sm:$0xff] (%p619_p6)  ;;  %v374_v44 = vld [vmem:[%s659_s26 + $0x18] sm:$0xff] (%p619_p6) }
  0xad   : > { %314 = vst [vmem:[%s659_s26 + $0x38] sm:$0xff] %v306_v39  ;;  %313 = vst [vmem:[%s659_s26 + $0x30] sm:$0xff] %v305_v40 }
  0xae   : > { %371 = vst [vmem:[%s326_s29 + $0x10] sm:$0xff] %v370_v42  ;;  %375 = vst [vmem:[%s326_s29 + $0x30] sm:$0xff] %v374_v44 }
  0xb0   : > { %v376_v45 = vld [vmem:[%s659_s26 + $0x20] sm:$0xff]  ;;  %v378_v46 = vld [vmem:[%s659_s26 + $0x28] sm:$0xff] }
  0xb1   : > { %377 = vst [vmem:[%s326_s29 + $0x40] sm:$0xff] %v376_v45  ;;  %379 = vst [vmem:[%s326_s29 + $0x50] sm:$0xff] %v378_v46 }
  0xb4   : > { %v380_v47 = vld [vmem:[%s659_s26 + $0x30] sm:$0xff]  ;;  %v382_v48 = vld [vmem:[%s659_s26 + $0x38] sm:$0xff] }
  0xb5   : > { %381 = vst [vmem:[%s326_s29 + $0x60] sm:$0xff] %v380_v47  ;;  %383 = vst [vmem:[%s326_s29 + $0x70] sm:$0xff] %v382_v48 }
  0xb6 PF: > { %s12_s13 = sadd.s32 1, %s566_s13   ;;  %s702_s9 = smov %s554_s10 }
  0xb7   : > { %p9_p11 = scmp.ge.s32.totalorder %s12_s13, 4   ;;  %s703_s10 = smov %s624_s19 }
  0xb8   : > { %s704_s11 = smov %s562_s12  ;;  %s705_s12 = smov %s707_s14 }
  0xb9   :  { %11 = sbr.rel (!%p9_p11) target bundleno = 3 (0x3), region = 142 }

</bundles_post_ra>
